<compile_context>
chip_gen: v7x
topology: tpu7x:2x2x1
jax: 0.10.0
libtpu: 0.0.40
codegen_flags: <defaults>
</compile_context>

<pallas_src>
import functools

import jax
import jax.numpy as jnp
from jax.experimental import pallas as pl
from jax.experimental.pallas import tpu as pltpu


def _round_up(x, m):
    return (x + m - 1) // m * m


def _vmem_block_bytes(shape, dtype):
    """Rough VMEM footprint of one block after (sublane, lane) layout padding."""
    itemsize = jnp.dtype(dtype).itemsize
    sub_mult = {4: 8, 2: 16, 1: 32}.get(itemsize, 8)
    lead = 1
    for d in shape[:-2]:
        lead *= int(d)
    sub = _round_up(int(shape[-2]), sub_mult)
    lane = _round_up(int(shape[-1]), 128)
    return lead * sub * lane * itemsize


def prepare_conv_params(weight, bias, lane=128):
    """One-time conv-param relayout (hoisted out of the forward path).

    torch weight (OC, IC, KH, KW) -> (KH*KW, IC, OCp) bf16, tap-major, with OC
    zero-padded to a multiple of `lane` so the kernel's output is lane-dense.
    bias (OC,) -> (1, OCp) f32, zero-padded past OC.
    """
    OC, IC, KH, KW = weight.shape
    OCp = _round_up(OC, lane)
    w3d = jnp.transpose(weight, (2, 3, 1, 0)).reshape(KH * KW, IC, OC)
    w3d = jnp.pad(w3d, ((0, 0), (0, 0), (0, OCp - OC))).astype(jnp.bfloat16)
    b2d = jnp.pad(bias, (0, OCp - OC)).astype(jnp.float32).reshape(1, OCp)
    return w3d, b2d


def _fused_conv_kernel(x_ref, w_ref, b_ref, o_ref, *, KH, KW, stride, OH, OW):
    # x_ref: (stride*stride, Hq, Wq, C) bf16 stride-phase-split padded image (one batch)
    # w_ref: (KH*KW, C, OCp)            bf16 tap-major conv weight (constant index -> resident)
    # b_ref: (1, OCp)                   f32 bias (zero past real OC)
    # o_ref: (OH*OW, OCp)               output tokens for this image (lane-dense)
    T = OH * OW
    acc = jnp.zeros((T, o_ref.shape[-1]), jnp.float32)
    for p in range(stride * stride):
        pr, pc = p // stride, p % stride
        if pr >= KH or pc >= KW:
            continue                                   # phase owns no taps
        phase = x_ref[p]                               # (Hq, Wq, C), one VMEM load per phase
        for i in range(pr, KH, stride):                # taps with row-phase pr
            qr = i // stride
            for j in range(pc, KW, stride):            # taps with col-phase pc
                qc = j // stride
                sub = phase[qr:qr + OH, qc:qc + OW, :]  # static unit-stride window
                patch = sub.reshape(T, sub.shape[-1])   # (T, C) GEMM rows
                acc = acc + jnp.dot(patch, w_ref[i * KW + j],
                                    preferred_element_type=jnp.float32)
    acc = acc + b_ref[...]                             # f32 epilogue
    o_ref[...] = acc.astype(o_ref.dtype)


@functools.partial(
    jax.jit,
    static_argnames=("kernel_size", "stride", "padding", "out_channels", "pre_permute"))
def downsampling_forward(x, w3d, b2d, *, kernel_size, stride, padding,
                         out_channels, pre_permute=False):
    """MetaFormer Downsampling forward.

    x   : (B, C_in, H, W) if pre_permute=False, else (B, H, W, C_in)
    w3d : (KH*KW, C_in, OCp) bf16  (from prepare_conv_params)
    b2d : (1, OCp) f32             (from prepare_conv_params)
    returns (B, H_out, W_out, out_channels), channels-last, dtype of x.
    """
    # TODO(synk): pre_norm/post_norm are Identity here (module defaults: None); a
    #             supplied norm module would be fused into the epilogue separately.
    KH = KW = kernel_size
    OC = out_channels

    # Conv runs channels-last internally; pre_permute=True means the module input
    # is already NHWC (the torch module would permute it to NCHW before the conv).
    x_nhwc = x if pre_permute else jnp.transpose(x, (0, 2, 3, 1))
    B, H, W, C = x_nhwc.shape
    OCp = w3d.shape[-1]
    assert w3d.shape == (KH * KW, C, OCp), (w3d.shape, (KH * KW, C, OCp))

    OH = (H + 2 * padding - KH) // stride + 1
    OW = (W + 2 * padding - KW) // stride + 1
    T = OH * OW
    s2 = stride * stride
    # Phase-image extents: tap (i, j) reads phase rows [i//stride, i//stride + OH).
    Hq = OH + (KH - 1) // stride
    Wq = OW + (KW - 1) // stride
    Rt, Ct = stride * Hq, stride * Wq

    # bf16 BEFORE any relayout: all wrapper-side data movement is input-sized bf16.
    xb = x_nhwc.astype(jnp.bfloat16)
    xp = jnp.pad(xb, ((0, 0),
                      (padding, max(Rt - (H + padding), 0)),
                      (padding, max(Ct - (W + padding), 0)),
                      (0, 0)))
    xp = xp[:, :Rt, :Ct, :]
    # Space-to-depth by stride:
    #   xph[b*s2 + pr*stride + pc, r, c, :] == x_padded[b, r*stride+pr, c*stride+pc, :]
    xph = xp.reshape(B, Hq, stride, Wq, stride, C)
    xph = xph.transpose(0, 2, 4, 1, 3, 5).reshape(B * s2, Hq, Wq, C)

    out_dtype = x.dtype
    flops = 2 * B * T * C * KH * KW * OC
    bytes_accessed = int(xph.size * 2 + w3d.size * 2 + b2d.size * 4
                         + B * T * OCp * jnp.dtype(out_dtype).itemsize)

    # Explicit VMEM budget from the actual (layout-padded) blocks, double-buffered.
    in_blk = _vmem_block_bytes((s2, Hq, Wq, C), jnp.bfloat16)
    out_blk = _vmem_block_bytes((T, OCp), out_dtype)
    w_blk = _vmem_block_bytes((KH * KW, C, OCp), jnp.bfloat16)
    b_blk = _vmem_block_bytes((1, OCp), jnp.float32)
    acc_blk = _vmem_block_bytes((T, OCp), jnp.float32)
    vmem_need = 2 * (in_blk + out_blk + w_blk + b_blk) + acc_blk
    vmem_limit = int(min(64 * 2 ** 20, max(2 * vmem_need, 16 * 2 ** 20)))

    kernel = functools.partial(_fused_conv_kernel, KH=KH, KW=KW, stride=stride,
                               OH=OH, OW=OW)

    out3d = pl.pallas_call(
        kernel,
        out_shape=jax.ShapeDtypeStruct((B, T, OCp), out_dtype),
        grid_spec=pltpu.PrefetchScalarGridSpec(
            num_scalar_prefetch=0,
            grid=(B,),
            in_specs=[
                pl.BlockSpec((s2, Hq, Wq, C), lambda b: (b, 0, 0, 0)),
                pl.BlockSpec((KH * KW, C, OCp), lambda b: (0, 0, 0)),
                pl.BlockSpec((1, OCp), lambda b: (0, 0)),
            ],
            out_specs=pl.BlockSpec((None, T, OCp), lambda b: (b, 0, 0)),
        ),
        compiler_params=pltpu.CompilerParams(
            dimension_semantics=("parallel",),
            vmem_limit_bytes=vmem_limit),
        cost_estimate=pl.CostEstimate(
            flops=flops, transcendentals=0, bytes_accessed=bytes_accessed),
    )(xph, w3d, b2d)

    # Drop the lane padding, restore spatial dims (already channels-last, like
    # x.permute(0, 2, 3, 1)).  post_norm -> Identity (module default: None).
    return out3d[..., :OC].reshape(B, OH, OW, OC)


if __name__ == "__main__":
    # Module config: Downsampling(in_channels=16, out_channels=32, kernel_size=3,
    #                             stride=2, padding=1)  (pre/post norm = Identity)
    B, C_in, H, W = 2, 16, 16, 16
    C_out, ks = 32, 3
    stride, padding = 2, 1

    key = jax.random.PRNGKey(0)
    kx, kw, kb = jax.random.split(key, 3)
    x = jax.random.normal(kx, (B, C_in, H, W), dtype=jnp.float32)
    weight = jax.random.normal(kw, (C_out, C_in, ks, ks), dtype=jnp.float32) * 0.05
    bias = jax.random.normal(kb, (C_out,), dtype=jnp.float32) * 0.05

    # One-time weight/bias relayout, hoisted out of the forward path.
    w3d, b2d = prepare_conv_params(weight, bias)

    out = downsampling_forward(x, w3d, b2d, kernel_size=ks, stride=stride,
                               padding=padding, out_channels=C_out,
                               pre_permute=False)
    out = jax.block_until_ready(out)

    # Reference: same math (bf16 inputs, f32 accumulation) via XLA conv, then NHWC.
    ref_nchw = jax.lax.conv_general_dilated(
        x.astype(jnp.bfloat16), weight.astype(jnp.bfloat16),
        window_strides=(stride, stride),
        padding=[(padding, padding), (padding, padding)],
        dimension_numbers=("NCHW", "OIHW", "NCHW"),
        preferred_element_type=jnp.float32)
    ref = jnp.transpose(ref_nchw, (0, 2, 3, 1)) + bias.reshape(1, 1, 1, C_out)
    ref = ref.astype(x.dtype)

    assert out.shape == (B, H // stride, W // stride, C_out), out.shape
    assert jnp.allclose(out, ref, atol=1e-2, rtol=1e-2), \
        float(jnp.max(jnp.abs(out - ref)))

    print("KERNEL_OK")
</pallas_src>

<mosaic_0001>
module attributes {stable_mosaic.version = 11 : i64} {
  func.func @_fused_conv_kernel(%arg0: i32, %arg1: memref<4x9x9x16xbf16, #tpu.memory_space<vmem>>, %arg2: memref<9x16x128xbf16, #tpu.memory_space<vmem>>, %arg3: memref<1x128xf32, #tpu.memory_space<vmem>>, %arg4: memref<1x64x128xf32, #tpu.memory_space<vmem>>) attributes {dimension_semantics = [#tpu.dimension_semantics<parallel>], iteration_bounds = array<i64: 2>, scalar_prefetch = 0 : i64, scratch_operands = 0 : i64, tpu.core_type = #tpu.core_type<tc>, window_params = [{transform_indices = @transform_0, window_bounds = array<i64: 4, 9, 9, 16>}, {pipeline_mode = #tpu.pipeline_mode<synchronous>, transform_indices = @transform_1, window_bounds = array<i64: 9, 16, 128>}, {pipeline_mode = #tpu.pipeline_mode<synchronous>, transform_indices = @transform_2, window_bounds = array<i64: 1, 128>}, {transform_indices = @transform_3, window_bounds = array<i64: 1, 64, 128>}]} {
    %cst = arith.constant 0.000000e+00 : f32
    %0 = vector.broadcast %cst : f32 to vector<64x128xf32>
    %c0 = arith.constant 0 : index
    %c0_0 = arith.constant 0 : index
    %c0_1 = arith.constant 0 : index
    %c0_2 = arith.constant 0 : index
    %1 = vector.load %arg1[%c0, %c0_0, %c0_1, %c0_2] : memref<4x9x9x16xbf16, #tpu.memory_space<vmem>>, vector<1x9x9x16xbf16>
    %2 = vector.shape_cast %1 : vector<1x9x9x16xbf16> to vector<9x9x16xbf16>
    %3 = vector.extract_strided_slice %2 {offsets = [0, 0, 0], sizes = [8, 8, 16], strides = [1, 1, 1]} : vector<9x9x16xbf16> to vector<8x8x16xbf16>
    %4 = vector.shape_cast %3 : vector<8x8x16xbf16> to vector<64x16xbf16>
    %c0_3 = arith.constant 0 : index
    %c0_4 = arith.constant 0 : index
    %c0_5 = arith.constant 0 : index
    %5 = vector.load %arg2[%c0_3, %c0_4, %c0_5] : memref<9x16x128xbf16, #tpu.memory_space<vmem>>, vector<1x16x128xbf16>
    %6 = vector.shape_cast %5 : vector<1x16x128xbf16> to vector<16x128xbf16>
    %cst_6 = arith.constant dense<0.000000e+00> : vector<64x128xf32>
    %7 = tpu.matmul %4, %6, %cst_6 {dimension_numbers = #tpu.dot_dimension_numbers<[1], [0], [0], [1], [0, 0, 1, 1], [], []>} : vector<64x16xbf16>, vector<16x128xbf16>, vector<64x128xf32> -> vector<64x128xf32>
    %8 = arith.addf %0, %7 : vector<64x128xf32>
    %9 = vector.extract_strided_slice %2 {offsets = [0, 1, 0], sizes = [8, 8, 16], strides = [1, 1, 1]} : vector<9x9x16xbf16> to vector<8x8x16xbf16>
    %10 = vector.shape_cast %9 : vector<8x8x16xbf16> to vector<64x16xbf16>
    %c2 = arith.constant 2 : index
    %c0_7 = arith.constant 0 : index
    %c0_8 = arith.constant 0 : index
    %11 = vector.load %arg2[%c2, %c0_7, %c0_8] : memref<9x16x128xbf16, #tpu.memory_space<vmem>>, vector<1x16x128xbf16>
    %12 = vector.shape_cast %11 : vector<1x16x128xbf16> to vector<16x128xbf16>
    %cst_9 = arith.constant dense<0.000000e+00> : vector<64x128xf32>
    %13 = tpu.matmul %10, %12, %cst_9 {dimension_numbers = #tpu.dot_dimension_numbers<[1], [0], [0], [1], [0, 0, 1, 1], [], []>} : vector<64x16xbf16>, vector<16x128xbf16>, vector<64x128xf32> -> vector<64x128xf32>
    %14 = arith.addf %8, %13 : vector<64x128xf32>
    %15 = vector.extract_strided_slice %2 {offsets = [1, 0, 0], sizes = [8, 8, 16], strides = [1, 1, 1]} : vector<9x9x16xbf16> to vector<8x8x16xbf16>
    %16 = vector.shape_cast %15 : vector<8x8x16xbf16> to vector<64x16xbf16>
    %c6 = arith.constant 6 : index
    %c0_10 = arith.constant 0 : index
    %c0_11 = arith.constant 0 : index
    %17 = vector.load %arg2[%c6, %c0_10, %c0_11] : memref<9x16x128xbf16, #tpu.memory_space<vmem>>, vector<1x16x128xbf16>
    %18 = vector.shape_cast %17 : vector<1x16x128xbf16> to vector<16x128xbf16>
    %cst_12 = arith.constant dense<0.000000e+00> : vector<64x128xf32>
    %19 = tpu.matmul %16, %18, %cst_12 {dimension_numbers = #tpu.dot_dimension_numbers<[1], [0], [0], [1], [0, 0, 1, 1], [], []>} : vector<64x16xbf16>, vector<16x128xbf16>, vector<64x128xf32> -> vector<64x128xf32>
    %20 = arith.addf %14, %19 : vector<64x128xf32>
    %21 = vector.extract_strided_slice %2 {offsets = [1, 1, 0], sizes = [8, 8, 16], strides = [1, 1, 1]} : vector<9x9x16xbf16> to vector<8x8x16xbf16>
    %22 = vector.shape_cast %21 : vector<8x8x16xbf16> to vector<64x16xbf16>
    %c8 = arith.constant 8 : index
    %c0_13 = arith.constant 0 : index
    %c0_14 = arith.constant 0 : index
    %23 = vector.load %arg2[%c8, %c0_13, %c0_14] : memref<9x16x128xbf16, #tpu.memory_space<vmem>>, vector<1x16x128xbf16>
    %24 = vector.shape_cast %23 : vector<1x16x128xbf16> to vector<16x128xbf16>
    %cst_15 = arith.constant dense<0.000000e+00> : vector<64x128xf32>
    %25 = tpu.matmul %22, %24, %cst_15 {dimension_numbers = #tpu.dot_dimension_numbers<[1], [0], [0], [1], [0, 0, 1, 1], [], []>} : vector<64x16xbf16>, vector<16x128xbf16>, vector<64x128xf32> -> vector<64x128xf32>
    %26 = arith.addf %20, %25 : vector<64x128xf32>
    %c1 = arith.constant 1 : index
    %c0_16 = arith.constant 0 : index
    %c0_17 = arith.constant 0 : index
    %c0_18 = arith.constant 0 : index
    %27 = vector.load %arg1[%c1, %c0_16, %c0_17, %c0_18] : memref<4x9x9x16xbf16, #tpu.memory_space<vmem>>, vector<1x9x9x16xbf16>
    %28 = vector.shape_cast %27 : vector<1x9x9x16xbf16> to vector<9x9x16xbf16>
    %29 = vector.extract_strided_slice %28 {offsets = [0, 0, 0], sizes = [8, 8, 16], strides = [1, 1, 1]} : vector<9x9x16xbf16> to vector<8x8x16xbf16>
    %30 = vector.shape_cast %29 : vector<8x8x16xbf16> to vector<64x16xbf16>
    %c1_19 = arith.constant 1 : index
    %c0_20 = arith.constant 0 : index
    %c0_21 = arith.constant 0 : index
    %31 = vector.load %arg2[%c1_19, %c0_20, %c0_21] : memref<9x16x128xbf16, #tpu.memory_space<vmem>>, vector<1x16x128xbf16>
    %32 = vector.shape_cast %31 : vector<1x16x128xbf16> to vector<16x128xbf16>
    %cst_22 = arith.constant dense<0.000000e+00> : vector<64x128xf32>
    %33 = tpu.matmul %30, %32, %cst_22 {dimension_numbers = #tpu.dot_dimension_numbers<[1], [0], [0], [1], [0, 0, 1, 1], [], []>} : vector<64x16xbf16>, vector<16x128xbf16>, vector<64x128xf32> -> vector<64x128xf32>
    %34 = arith.addf %26, %33 : vector<64x128xf32>
    %35 = vector.extract_strided_slice %28 {offsets = [1, 0, 0], sizes = [8, 8, 16], strides = [1, 1, 1]} : vector<9x9x16xbf16> to vector<8x8x16xbf16>
    %36 = vector.shape_cast %35 : vector<8x8x16xbf16> to vector<64x16xbf16>
    %c7 = arith.constant 7 : index
    %c0_23 = arith.constant 0 : index
    %c0_24 = arith.constant 0 : index
    %37 = vector.load %arg2[%c7, %c0_23, %c0_24] : memref<9x16x128xbf16, #tpu.memory_space<vmem>>, vector<1x16x128xbf16>
    %38 = vector.shape_cast %37 : vector<1x16x128xbf16> to vector<16x128xbf16>
    %cst_25 = arith.constant dense<0.000000e+00> : vector<64x128xf32>
    %39 = tpu.matmul %36, %38, %cst_25 {dimension_numbers = #tpu.dot_dimension_numbers<[1], [0], [0], [1], [0, 0, 1, 1], [], []>} : vector<64x16xbf16>, vector<16x128xbf16>, vector<64x128xf32> -> vector<64x128xf32>
    %40 = arith.addf %34, %39 : vector<64x128xf32>
    %c2_26 = arith.constant 2 : index
    %c0_27 = arith.constant 0 : index
    %c0_28 = arith.constant 0 : index
    %c0_29 = arith.constant 0 : index
    %41 = vector.load %arg1[%c2_26, %c0_27, %c0_28, %c0_29] : memref<4x9x9x16xbf16, #tpu.memory_space<vmem>>, vector<1x9x9x16xbf16>
    %42 = vector.shape_cast %41 : vector<1x9x9x16xbf16> to vector<9x9x16xbf16>
    %43 = vector.extract_strided_slice %42 {offsets = [0, 0, 0], sizes = [8, 8, 16], strides = [1, 1, 1]} : vector<9x9x16xbf16> to vector<8x8x16xbf16>
    %44 = vector.shape_cast %43 : vector<8x8x16xbf16> to vector<64x16xbf16>
    %c3 = arith.constant 3 : index
    %c0_30 = arith.constant 0 : index
    %c0_31 = arith.constant 0 : index
    %45 = vector.load %arg2[%c3, %c0_30, %c0_31] : memref<9x16x128xbf16, #tpu.memory_space<vmem>>, vector<1x16x128xbf16>
    %46 = vector.shape_cast %45 : vector<1x16x128xbf16> to vector<16x128xbf16>
    %cst_32 = arith.constant dense<0.000000e+00> : vector<64x128xf32>
    %47 = tpu.matmul %44, %46, %cst_32 {dimension_numbers = #tpu.dot_dimension_numbers<[1], [0], [0], [1], [0, 0, 1, 1], [], []>} : vector<64x16xbf16>, vector<16x128xbf16>, vector<64x128xf32> -> vector<64x128xf32>
    %48 = arith.addf %40, %47 : vector<64x128xf32>
    %49 = vector.extract_strided_slice %42 {offsets = [0, 1, 0], sizes = [8, 8, 16], strides = [1, 1, 1]} : vector<9x9x16xbf16> to vector<8x8x16xbf16>
    %50 = vector.shape_cast %49 : vector<8x8x16xbf16> to vector<64x16xbf16>
    %c5 = arith.constant 5 : index
    %c0_33 = arith.constant 0 : index
    %c0_34 = arith.constant 0 : index
    %51 = vector.load %arg2[%c5, %c0_33, %c0_34] : memref<9x16x128xbf16, #tpu.memory_space<vmem>>, vector<1x16x128xbf16>
    %52 = vector.shape_cast %51 : vector<1x16x128xbf16> to vector<16x128xbf16>
    %cst_35 = arith.constant dense<0.000000e+00> : vector<64x128xf32>
    %53 = tpu.matmul %50, %52, %cst_35 {dimension_numbers = #tpu.dot_dimension_numbers<[1], [0], [0], [1], [0, 0, 1, 1], [], []>} : vector<64x16xbf16>, vector<16x128xbf16>, vector<64x128xf32> -> vector<64x128xf32>
    %54 = arith.addf %48, %53 : vector<64x128xf32>
    %c3_36 = arith.constant 3 : index
    %c0_37 = arith.constant 0 : index
    %c0_38 = arith.constant 0 : index
    %c0_39 = arith.constant 0 : index
    %55 = vector.load %arg1[%c3_36, %c0_37, %c0_38, %c0_39] : memref<4x9x9x16xbf16, #tpu.memory_space<vmem>>, vector<1x9x9x16xbf16>
    %56 = vector.shape_cast %55 : vector<1x9x9x16xbf16> to vector<9x9x16xbf16>
    %57 = vector.extract_strided_slice %56 {offsets = [0, 0, 0], sizes = [8, 8, 16], strides = [1, 1, 1]} : vector<9x9x16xbf16> to vector<8x8x16xbf16>
    %58 = vector.shape_cast %57 : vector<8x8x16xbf16> to vector<64x16xbf16>
    %c4 = arith.constant 4 : index
    %c0_40 = arith.constant 0 : index
    %c0_41 = arith.constant 0 : index
    %59 = vector.load %arg2[%c4, %c0_40, %c0_41] : memref<9x16x128xbf16, #tpu.memory_space<vmem>>, vector<1x16x128xbf16>
    %60 = vector.shape_cast %59 : vector<1x16x128xbf16> to vector<16x128xbf16>
    %cst_42 = arith.constant dense<0.000000e+00> : vector<64x128xf32>
    %61 = tpu.matmul %58, %60, %cst_42 {dimension_numbers = #tpu.dot_dimension_numbers<[1], [0], [0], [1], [0, 0, 1, 1], [], []>} : vector<64x16xbf16>, vector<16x128xbf16>, vector<64x128xf32> -> vector<64x128xf32>
    %62 = arith.addf %54, %61 : vector<64x128xf32>
    %c0_43 = arith.constant 0 : index
    %c0_44 = arith.constant 0 : index
    %63 = vector.load %arg3[%c0_43, %c0_44] : memref<1x128xf32, #tpu.memory_space<vmem>>, vector<1x128xf32>
    %64 = vector.broadcast %63 : vector<1x128xf32> to vector<64x128xf32>
    %65 = arith.addf %62, %64 : vector<64x128xf32>
    %c0_45 = arith.constant 0 : index
    %c0_46 = arith.constant 0 : index
    %c0_47 = arith.constant 0 : index
    %66 = vector.load %arg4[%c0_45, %c0_46, %c0_47] : memref<1x64x128xf32, #tpu.memory_space<vmem>>, vector<1x64x128xf32>
    %67 = vector.shape_cast %66 : vector<1x64x128xf32> to vector<64x128xf32>
    %68 = vector.shape_cast %65 : vector<64x128xf32> to vector<1x64x128xf32>
    tpu.vector_store %arg4[%c0_45, %c0_46, %c0_47], %68 {strides = array<i32>} : memref<1x64x128xf32, #tpu.memory_space<vmem>>, vector<1x64x128xf32>,
    return
  }
  func.func @transform_0(%arg0: i32) -> (i32, i32, i32, i32) {
    %c0_i32 = arith.constant 0 : i32
    %c0_i32_0 = arith.constant 0 : i32
    %c0_i32_1 = arith.constant 0 : i32
    %c0_i32_2 = arith.constant 0 : i32
    return %arg0, %c0_i32, %c0_i32_0, %c0_i32_1 : i32, i32, i32, i32
  }
  func.func @transform_1(%arg0: i32) -> (i32, i32, i32) {
    %c0_i32 = arith.constant 0 : i32
    %c0_i32_0 = arith.constant 0 : i32
    %c0_i32_1 = arith.constant 0 : i32
    %c0_i32_2 = arith.constant 0 : i32
    return %c0_i32, %c0_i32_0, %c0_i32_1 : i32, i32, i32
  }
  func.func @transform_2(%arg0: i32) -> (i32, i32) {
    %c0_i32 = arith.constant 0 : i32
    %c0_i32_0 = arith.constant 0 : i32
    %c0_i32_1 = arith.constant 0 : i32
    return %c0_i32, %c0_i32_0 : i32, i32
  }
  func.func @transform_3(%arg0: i32) -> (i32, i32, i32) {
    %c0_i32 = arith.constant 0 : i32
    %c0_i32_0 = arith.constant 0 : i32
    %c0_i32_1 = arith.constant 0 : i32
    return %arg0, %c0_i32, %c0_i32_0 : i32, i32, i32
  }
}

</mosaic_0001>

<bundles_post_ra>
// kernel: downsampling_forward.1
= control target key start
LH: loop header
LB: loop body
LE: loop exit
PB: predicated region body
PF: predicated region fallthrough
CT: control target
= control target key end

     0   :  { %s1915_s12 = smov 0   ;;  %s2237_s0 = inlined_call_operand.vmem [shape: bf16[8,9,9,16], index: 0, kind: input, shape index: {}]   ;;  %s2238_s1 = inlined_call_operand.vmem [shape: bf16[9,16,128], index: 1, kind: input, shape index: {}]   ;;  %s2239_s2 = inlined_call_operand.vmem [shape: f32[1,128], index: 2, kind: input, shape index: {}]   ;;  %s2240_s3 = inlined_call_operand.vmem [shape: f32[2,64,128], index: 3, kind: output, shape index: {}]  }
   0x1 LB: > { %s1921_s13 = sadd.s32 4294967295, %s1893_s12   ;;  %p1505_p0 = scmp.ge.s32.totalorder %s1893_s12, 1  ;;  %s1893_s12 = sphi %s1915_s12, %s13_s12  }
   0x2   : > { %p139_p1 = scmp.lt.s32.totalorder %s1893_s12, 3 }
   0x4   : > { %p140_p2 = pnand %p1505_p0, %p139_p1 }
   0x5   : > { %v1928_v0 = vld [vmem:[%s2238_s1 + $0x8] sm:$0xff] (!%p140_p2)   ;;  %s1506_s16 = sshll.u32 (!%p140_p2), %s1921_s13, 2  ;;  %v1859_v1 = vld [vmem:[%s2238_s1 + $0x10] sm:$0xff] (!%p140_p2)   ;;  %v1938_v2 = vld [vmem:[%s2238_s1] sm:$0xff] (!%p140_p2)   ;;  %vm333_vm0 = vcmask (!%p140_p2), 130048   ;;  %p171_p4 = scmp.lt.s32.totalorder (!%p140_p2), %s1921_s13, 1 }
   0x6   : > { %143 = sbr.rel (%p140_p2) target bundleno = 326 (0x146), region = 32  ;;  %p165_p3 = scmp.lt.s32.totalorder (!%p140_p2), %s1506_s16, 7  ;;  %1729 = vmatprep.subr.bf16.mxu0 (!%p140_p2), %v1928_v0  ;;  %1689 = vmatprep.subr.bf16.mxu1 (!%p140_p2), %v1859_v1  ;;  %v1861_v3 = vld [vmem:[%s2238_s1 + $0x38] sm:$0xff] (!%p140_p2)   ;;  %vm197_vm1 = vsmask.f32 (!%p140_p2), 3328 }
   0x7   : > { %1730 = vmatpush3.bf16.msra.mxu0 (!%p140_p2), %v1928_v0  ;;  %1690 = vmatpush3.bf16.msra.mxu1 (!%p140_p2), %v1859_v1  ;;  %v1962_v11 = vld [vmem:[%s2238_s1 + $0x18] sm:$0xff] (!%p140_p2)   ;;  %vm198_vm2 = vsmask.f32 (!%p140_p2), 7440 }
   0x8   : > { %1699 = vmatprep.subr.bf16.mxu1 (!%p140_p2), %v1938_v2  ;;  %1739 = vmatprep.subr.bf16.mxu0 (!%p140_p2), %v1861_v3  ;;  %vm2001_vm3 = vmor (!%p140_p2), %vm197_vm1, %vm198_vm2 }
   0xd   : > { %s2244_s16 = smov (!%p165_p3, %s1506_s16), 7  ;;  %s2246_s13 = smov (!%p171_p4, %s1921_s13), 1 }
   0xe   : > { %s1845_s23 = smul.u32 72, %s2244_s16  ;;  %s1643_s10 = sshll.u32 %s2246_s13, 6 }
   0xf   : > { %s2224_s17 = scalar_lea.vmem %s2240_s3, %s1643_s10 }
  0x10   : > { %s1948_s26 = scalar_lea.vmem %s2237_s0, %s1845_s23 }
  0x11   : > { %v1552_v4 = vld [vmem:[%s1948_s26 + $0x48] sm:$0xf]  ;;  %v1553_v5 = vld [vmem:[%s1948_s26 + $0x50] sm:$0xf]  ;;  %v1554_v6 = vld [vmem:[%s1948_s26 + $0x58] sm:$0xf] }
  0x12   : > { %v1954_v7 = vld [vmem:[%s1948_s26 + $0x60] sm:$0xf]  ;;  %v1957_v8 = vld [vmem:[%s1948_s26 + $0x68] sm:$0xf]  ;;  %v1563_v9 = vcombine.low %v1552_v4, %v1553_v5  ;;  %v1574_v10 = vcombine.low %v1553_v5, %v1554_v6  ;;  %v178_v14 = vld [vmem:[%s1948_s26 + $0x4] sm:$0x1] }
  0x13   : > { %v1564_v12 = vcombine.low %v1554_v6, %v1954_v7  ;;  %v1966_v13 = vld [vmem:[%s1948_s26] sm:$0xf]  ;;  %v1970_v15 = vld [vmem:[%s1948_s26 + $0x8] sm:$0xf]  ;;  %v180_v16 = vld [vmem:[%s1948_s26 + $0xc] sm:$0x1]  ;;  %v1575_v18 = vcombine.low %v1954_v7, %v1957_v8 }
  0x14   : > { %1731 = vmatprep.mubr.msk.bf16.mxu0 %vm333_vm0, %v1563_v9  ;;  %v1975_v17 = vld [vmem:[%s1948_s26 + $0x10] sm:$0xf]  ;;  %v182_v19 = vld [vmem:[%s1948_s26 + $0x14] sm:$0x1]  ;;  %v1982_v20 = vld [vmem:[%s1948_s26 + $0x18] sm:$0xf] }
  0x15   : > { %1732 = vmatmul.mubr.msk.bf16.vlgmr.msra.gmra.mrb[0].mxu0 %vm333_vm0, %v1564_v12  ;;  %v201_v21 = vshrl.u32 %v1966_v13, 16  ;;  %v204_v22 = vshll.u32 %v1966_v13, 16  ;;  %v210_v23 = vshll.u32 %v178_v14, 16  ;;  %v215_v24 = vshrl.u32 %v1970_v15, 16  ;;  %v184_v25 = vld [vmem:[%s1948_s26 + $0x1c] sm:$0x1] }
  0x16   : > { %1740 = vmatpush3.bf16.msra.mxu0 %v1861_v3  ;;  %1741 = vmatprep.mubr.msk.bf16.mxu0 %vm333_vm0, %v1574_v10  ;;  %v218_v26 = vshll.u32 %v1970_v15, 16  ;;  %v224_v27 = vshll.u32 %v180_v16, 16  ;;  %v229_v28 = vshrl.u32 %v1975_v17, 16  ;;  %v232_v29 = vshll.u32 %v1975_v17, 16  ;;  %v1994_v30 = vld [vmem:[%s1948_s26 + $0x20] sm:$0xf] }
  0x17   : > { %1749 = vmatprep.subr.bf16.mxu0 %v1962_v11  ;;  %v203_v31 = vrot.slane %v201_v21, 4  ;;  %v206_v32 = vrot.slane %v204_v22, 5  ;;  %v212_v33 = vrot.slane %v210_v23, 5  ;;  %v217_v34 = vrot.slane %v215_v24, 4  ;;  %v186_v43 = vld [vmem:[%s1948_s26 + $0x24] sm:$0x1] }
  0x18   : > { %v220_v35 = vrot.slane %v218_v26, 5  ;;  %v226_v36 = vrot.slane %v224_v27, 5  ;;  %v231_v37 = vrot.slane %v229_v28, 4  ;;  %v234_v38 = vrot.slane %v232_v29, 5  ;;  %v2007_v53 = vld [vmem:[%s1948_s26 + $0x28] sm:$0xf] }
  0x19   : > { %v207_v39 = vor.u32 %v206_v32, %v203_v31  ;;  %v238_v40 = vshll.u32 %v182_v19, 16  ;;  %v243_v41 = vshrl.u32 %v1982_v20, 16  ;;  %v246_v42 = vshll.u32 %v1982_v20, 16  ;;  %v188_v62 = vld [vmem:[%s1948_s26 + $0x2c] sm:$0x1] }
  0x1a   : > { %v221_v45 = vor.u32 %v220_v35, %v217_v34  ;;  %v235_v46 = vor.u32 %v234_v38, %v231_v37  ;;  %v252_v47 = vshll.u32 %v184_v25, 16  ;;  %v257_v48 = vshrl.u32 %v1994_v30, 16  ;;  %v2020_v4 = vld [vmem:[%s1948_s26 + $0x30] sm:$0xf]  ;;  %v2025_v5 = vld [vmem:[%s2238_s1 + $0x28] sm:$0xff]  }
  0x1b   : > { %v208_v49 = vrot.slane %v207_v39, 4  ;;  %v240_v50 = vrot.slane %v238_v40, 5  ;;  %v245_v51 = vrot.slane %v243_v41, 4  ;;  %v248_v52 = vrot.slane %v246_v42, 5  ;;  %v190_v14 = vld [vmem:[%s1948_s26 + $0x34] sm:$0x1] }
  0x1c   : > { %v222_v54 = vrot.slane %v221_v45, 4  ;;  %v236_v55 = vrot.slane %v235_v46, 4  ;;  %v254_v56 = vrot.slane %v252_v47, 5  ;;  %v259_v57 = vrot.slane %v257_v48, 4  ;;  %v2034_v16 = vld [vmem:[%s1948_s26 + $0x38] sm:$0xf] }
  0x1d   : > { %v213_v58 = vsel %vm2001_vm3, %v208_v49, %v212_v33  ;;  %v249_v59 = vor.u32 %v248_v52, %v245_v51  ;;  %v260_v60 = vshll.u32 %v1994_v30, 16  ;;  %v266_v61 = vshll.u32 %v186_v43, 16  ;;  %v192_v24 = vld [vmem:[%s1948_s26 + $0x3c] sm:$0x1]  ;;  %v2044_v25 = vld [vmem:[%s2238_s1 + $0x30] sm:$0xff]  }
  0x1e   : > { %v2015_v63 = vsel %vm2001_vm3, %v222_v54, %v226_v36  ;;  %v271_v1 = vshrl.u32 %v2007_v53, 16  ;;  %v274_v3 = vshll.u32 %v2007_v53, 16  ;;  %v2029_v6 = vsel %vm2001_vm3, %v236_v55, %v240_v50  ;;  %v2054_v28 = vld [vmem:[%s1948_s26 + $0x70] sm:$0xf]  ;;  %v2057_v29 = vld [vmem:[%s1948_s26 + $0x78] sm:$0xf] }
  0x1f   : > { %v250_v9 = vrot.slane %v249_v59, 4  ;;  %v262_v10 = vrot.slane %v260_v60, 5  ;;  %v1512_v12 = vcombine.low %v213_v58, %v2015_v63  ;;  %v268_v19 = vrot.slane %v266_v61, 5  ;;  %v2063_v35 = vld [vmem:[%s1948_s26 + $0x80] sm:$0xf] }
  0x20   : > { %v273_v21 = vrot.slane %v271_v1, 4  ;;  %v276_v22 = vrot.slane %v274_v3, 5  ;;  %v280_v23 = vshll.u32 %v188_v62, 16  ;;  %v285_v7 = vshrl.u32 %v2020_v4, 16  ;;  %v1560_v42 = vld [vmem:[%s1948_s26 + $0x88] sm:$0xf] }
  0x21   : > { %1742 = vmatmul.mubr.msk.bf16.vlgmr.msra.gmra.mrb[0].mxu0 %vm333_vm0, %v1575_v18  ;;  %v2048_v26 = vsel %vm2001_vm3, %v250_v9, %v254_v56  ;;  %v263_v27 = vor.u32 %v262_v10, %v259_v57  ;;  %1691 = vmatprep.mubr.msk.bf16.mxu1 %vm333_vm0, %v1512_v12  ;;  %v288_v18 = vshll.u32 %v2020_v4, 16  ;;  %v294_v34 = vshll.u32 %v190_v14, 16  ;;  %v1583_v48 = vld [vmem:[%s1948_s26 + $0x90] sm:$0xf]  ;;  %v1585_v49 = vld [vmem:[%s1948_s26 + $0x98] sm:$0xf] }
  0x22   : > { %1750 = vmatpush3.bf16.msra.mxu0 %v1962_v11  ;;  %v1513_v31 = vcombine.low %v2029_v6, %v2048_v26  ;;  %v277_v32 = vor.u32 %v276_v22, %v273_v21  ;;  %v282_v33 = vrot.slane %v280_v23, 5  ;;  %v287_v37 = vrot.slane %v285_v7, 4  ;;  %v1587_v61 = vld [vmem:[%s1948_s26 + $0xa0] sm:$0xf]  ;;  %v1589_v62 = vld [vmem:[%s1948_s26 + $0xa8] sm:$0xf] }
  0x23   : > { %1759 = vmatprep.subr.bf16.mxu0 %v2025_v5  ;;  %v264_v36 = vrot.slane %v263_v27, 4  ;;  %v290_v38 = vrot.slane %v288_v18, 5  ;;  %v299_v39 = vshrl.u32 %v2034_v16, 16  ;;  %v302_v40 = vshll.u32 %v2034_v16, 16  ;;  %v1591_v14 = vld [vmem:[%s1948_s26 + $0xb0] sm:$0xf] }
  0x24   : > { %1692 = vmatmul.mubr.msk.bf16.vlgmr.msra.gmra.mrb[0].mxu1 %vm333_vm0, %v1513_v31  ;;  %v278_v11 = vrot.slane %v277_v32, 4  ;;  %v308_v41 = vshll.u32 %v192_v24, 16  ;;  %v1576_v47 = vcombine.low %v2054_v28, %v2057_v29  ;;  %v296_v51 = vrot.slane %v294_v34, 5  ;;  %v1593_v24 = vld [vmem:[%s1948_s26 + $0xb8] sm:$0xf] }
  0x25   : > { %v2072_v43 = vsel %vm2001_vm3, %v264_v36, %v268_v19  ;;  %1700 = vmatpush3.bf16.msra.mxu1 %v1938_v2  ;;  %v291_v45 = vor.u32 %v290_v38, %v287_v37  ;;  %v301_v46 = vrot.slane %v299_v39, 4  ;;  %v304_v52 = vrot.slane %v302_v40, 5  ;;  %v2112_v36 = vld [vmem:[%s1948_s26 + $0xc0] sm:$0xf]  ;;  %v1597_v37 = vld [vmem:[%s1948_s26 + $0xc8] sm:$0xf] }
  0x26   : > { %v2081_v50 = vsel %vm2001_vm3, %v278_v11, %v282_v33  ;;  %1709 = vmatprep.subr.bf16.mxu1 %v2044_v25  ;;  %1745 = vmatprep.mubr.msk.bf16.mxu0 %vm333_vm0, %v1576_v47  ;;  %v1566_v55 = vcombine.low %v2057_v29, %v2063_v35  ;;  %v1577_v56 = vcombine.low %v2063_v35, %v1560_v42  ;;  %v310_v58 = vrot.slane %v308_v41, 5  ;;  %v1584_v41 = vld [vmem:[%s1948_s26 + $0x94] sm:$0x1]  ;;  %v1586_v42 = vld [vmem:[%s1948_s26 + $0x9c] sm:$0x1] }
  0x27   : > { %v1514_v2 = vcombine.low %v2072_v43, %v2081_v50  ;;  %v292_v54 = vrot.slane %v291_v45, 4  ;;  %v305_v57 = vor.u32 %v304_v52, %v301_v46  ;;  %v1601_v59 = vcombine.low %v1583_v48, %v1585_v49 }
  0x28   : > { %v1083_v60 = vshrl.u32 %v1583_v48, 16  ;;  %v1086_v1 = vshll.u32 %v1583_v48, 16  ;;  %v1097_v3 = vshrl.u32 %v1585_v49, 16  ;;  %v1100_v12 = vshll.u32 %v1585_v49, 16  ;;  %v1588_v49 = vld [vmem:[%s1948_s26 + $0xa4] sm:$0x1] }
  0x29   : > { %1695 = vmatprep.mubr.msk.bf16.mxu1 %vm333_vm0, %v1514_v2  ;;  %1746 = vmatmul.mubr.msk.bf16.gmra.mrb[4].mxu0 %vm333_vm0, %v1577_v56  ;;  %v2096_v9 = vsel %vm2001_vm3, %v292_v54, %v296_v51  ;;  %v306_v10 = vrot.slane %v305_v57, 4  ;;  %v1521_v19 = vcombine.low %v1966_v13, %v1970_v15  ;;  %v1522_v21 = vcombine.low %v1975_v17, %v1982_v20  ;;  %v2124_v51 = vld [vmem:[%s2238_s1 + $0x20] sm:$0xff]  }
  0x2a   : > { %1751 = vmatprep.mubr.msk.bf16.mxu0 %vm333_vm0, %v1601_v59  ;;  %v1602_v22 = vcombine.low %v1587_v61, %v1589_v62  ;;  %v1111_v23 = vshrl.u32 %v1587_v61, 16  ;;  %v1114_v7 = vshll.u32 %v1587_v61, 16  ;;  %v1125_v18 = vshrl.u32 %v1589_v62, 16  ;;  %v1590_v61 = vld [vmem:[%s1948_s26 + $0xac] sm:$0x1] }
  0x2b   : > { %v2107_v27 = vsel %vm2001_vm3, %v306_v10, %v310_v58  ;;  %v1128_v31 = vshll.u32 %v1589_v62, 16  ;;  %v1085_v33 = vrot.slane %v1083_v60, 4  ;;  %v1088_v13 = vrot.slane %v1086_v1, 5 }
  0x2c   : > { %v1515_v32 = vcombine.low %v2096_v9, %v2107_v27  ;;  %v1099_v34 = vrot.slane %v1097_v3, 4  ;;  %v1102_v38 = vrot.slane %v1100_v12, 5  ;;  %v1603_v39 = vcombine.low %v1591_v14, %v1593_v24 }
  0x2d   : > { %v1139_v11 = vshrl.u32 %v1591_v14, 16  ;;  %v1142_v40 = vshll.u32 %v1591_v14, 16  ;;  %v1113_v45 = vrot.slane %v1111_v23, 4  ;;  %v1523_v46 = vcombine.low %v1994_v30, %v2007_v53 }
  0x2e   : > { %1696 = vmatmul.mubr.msk.bf16.gmra.mrb[4].mxu1 %vm333_vm0, %v1515_v32  ;;  %v1153_v47 = vshrl.u32 %v1593_v24, 16  ;;  %v1156_v48 = vshll.u32 %v1593_v24, 16  ;;  %v1116_v52 = vrot.slane %v1114_v7, 5  ;;  %v1127_v2 = vrot.slane %v1125_v18, 4 }
  0x2f   : > { %1701 = vmatprep.mubr.msk.bf16.mxu1 %vm333_vm0, %v1521_v19  ;;  %v1130_v54 = vrot.slane %v1128_v31, 5  ;;  %v1167_v56 = vshrl.u32 %v2112_v36, 16  ;;  %v1141_v57 = vrot.slane %v1139_v11, 4  ;;  %v1144_v58 = vrot.slane %v1142_v40, 5  ;;  %v1877_v31 = vld [vmem:[%s2238_s1 + $0x40] sm:$0xff]  }
  0x30   : > { %v1170_v59 = vshll.u32 %v2112_v36, 16  ;;  %v1181_v60 = vshrl.u32 %v1597_v37, 16  ;;  %v1155_v62 = vrot.slane %v1153_v47, 4  ;;  %v1158_v1 = vrot.slane %v1156_v48, 5 }
  0x31   : > { %1752 = vmatmul.mubr.msk.bf16.vlgmr.msra.gmra.mrb[0].mxu0 %vm333_vm0, %v1602_v22  ;;  %v1604_v3 = vcombine.low %v2112_v36, %v1597_v37  ;;  %v1089_v10 = vor.u32 %v1088_v13, %v1085_v33  ;;  %v1184_v12 = vshll.u32 %v1597_v37, 16  ;;  %v1092_v14 = vshll.u32 %v1584_v41, 16 }
  0x32   : > { %1755 = vmatprep.mubr.msk.bf16.mxu0 %vm333_vm0, %v1603_v39  ;;  %1760 = vmatpush3.bf16.msra.mxu0 %v2025_v5  ;;  %v1103_v19 = vor.u32 %v1102_v38, %v1099_v34  ;;  %v1106_v22 = vshll.u32 %v1586_v42, 16  ;;  %v1117_v24 = vor.u32 %v1116_v52, %v1113_v45  ;;  %v1120_v7 = vshll.u32 %v1588_v49, 16  ;;  %v1592_v39 = vld [vmem:[%s1948_s26 + $0xb4] sm:$0x1]  ;;  %v1594_v45 = vld [vmem:[%s1948_s26 + $0xbc] sm:$0x1] }
  0x33   : > { %1769 = vmatprep.subr.bf16.mxu0 %v2124_v51  ;;  %v1090_v23 = vrot.slane %v1089_v10, 4  ;;  %v1131_v18 = vor.u32 %v1130_v54, %v1127_v2  ;;  %v1094_v32 = vrot.slane %v1092_v14, 5  ;;  %v1134_v33 = vshll.u32 %v1590_v61, 16 }
  0x34   : > { %v1104_v36 = vrot.slane %v1103_v19, 4  ;;  %v1108_v5 = vrot.slane %v1106_v22, 5  ;;  %v1169_v13 = vrot.slane %v1167_v56, 4  ;;  %v1118_v37 = vrot.slane %v1117_v24, 4  ;;  %v1596_v56 = vld [vmem:[%s1948_s26 + $0xc4] sm:$0x1] }
  0x35   : > { %v1122_v34 = vrot.slane %v1120_v7, 5  ;;  %v1132_v38 = vrot.slane %v1131_v18, 4  ;;  %v1172_v11 = vrot.slane %v1170_v59, 5  ;;  %v1095_v40 = vsel %vm2001_vm3, %v1090_v23, %v1094_v32  ;;  %v1598_v59 = vld [vmem:[%s1948_s26 + $0xcc] sm:$0x1] }
  0x36   : > { %1702 = vmatmul.mubr.msk.bf16.vlgmr.msra.gmra.mrb[0].mxu1 %vm333_vm0, %v1522_v21  ;;  %v1109_v41 = vsel %vm2001_vm3, %v1104_v36, %v1108_v5  ;;  %v1136_v42 = vrot.slane %v1134_v33, 5  ;;  %v1183_v47 = vrot.slane %v1181_v60, 4  ;;  %v1186_v48 = vrot.slane %v1184_v12, 5 }
  0x37   : > { %1710 = vmatpush3.bf16.msra.mxu1 %v2044_v25  ;;  %1705 = vmatprep.mubr.msk.bf16.mxu1 %vm333_vm0, %v1523_v46  ;;  %v1612_v49 = vcombine.low %v1095_v40, %v1109_v41  ;;  %v1532_v21 = vcombine.low %v1970_v15, %v1975_v17  ;;  %v1145_v52 = vor.u32 %v1144_v58, %v1141_v57  ;;  %v1148_v2 = vshll.u32 %v1592_v39, 16 }
  0x38   : > { %1719 = vmatprep.subr.bf16.mxu1 %v1877_v31  ;;  %v1159_v54 = vor.u32 %v1158_v1, %v1155_v62  ;;  %v1524_v61 = vcombine.low %v2020_v4, %v2034_v16  ;;  %v1123_v25 = vsel %vm2001_vm3, %v1118_v37, %v1122_v34  ;;  %v1137_v46 = vsel %vm2001_vm3, %v1132_v38, %v1136_v42  ;;  %v1882_v37 = vld [vmem:[%s1948_s26 + $0xd8] ss:$8 sps:$4 sm:$0xff]  }
  0x39   : > { %1756 = vmatmul.mubr.msk.bf16.gmra.mrb[4].mxu0 %vm333_vm0, %v1604_v3  ;;  %v1162_v60 = vshll.u32 %v1594_v45, 16  ;;  %v1146_v3 = vrot.slane %v1145_v52, 4  ;;  %v1150_v15 = vrot.slane %v1148_v2, 5  ;;  %v1173_v57 = vor.u32 %v1172_v11, %v1169_v13  ;;  %v193_v34 = vld [vmem:[%s1948_s26 + $0x40] sm:$0xf] }
  0x3a   : > { %1761 = vmatprep.mubr.msk.bf16.mxu0 %vm333_vm0, %v1612_v49  ;;  %v1160_v17 = vrot.slane %v1159_v54, 4  ;;  %v1176_v62 = vshll.u32 %v1596_v56, 16  ;;  %v1187_v1 = vor.u32 %v1186_v48, %v1183_v47  ;;  %v1190_v10 = vshll.u32 %v1598_v59, 16  ;;  %v1884_v11 = vld [vmem:[%s1948_s26 + $0xf8] ss:$8 sps:$4 sm:$0xff]  }
  0x3b   : > { %v1164_v58 = vrot.slane %v1162_v60, 5  ;;  %v1613_v12 = vcombine.low %v1123_v25, %v1137_v46  ;;  %v1151_v14 = vsel %vm2001_vm3, %v1146_v3, %v1150_v15  ;;  %v1174_v19 = vrot.slane %v1173_v57, 4  ;;  %v1885_v45 = vld [vmem:[%s1948_s26 + $0x108] ss:$8 sps:$4 sm:$0xff]  }
  0x3c   : > { %v1178_v23 = vrot.slane %v1176_v62, 5  ;;  %v1188_v24 = vrot.slane %v1187_v1, 4  ;;  %v1192_v7 = vrot.slane %v1190_v10, 5  ;;  %v1533_v5 = vcombine.low %v1982_v20, %v1994_v30 }
  0x3d   : > { %v1165_v22 = vsel %vm2001_vm3, %v1160_v17, %v1164_v58  ;;  %v1534_v33 = vcombine.low %v2007_v53, %v2020_v4  ;;  %v615_v38 = vshrl.u32 %v193_v34, 16  ;;  %v618_v39 = vshll.u32 %v193_v34, 16 }
  0x3e   : > { %1706 = vmatmul.mubr.msk.bf16.gmra.mrb[4].mxu1 %vm333_vm0, %v1524_v61  ;;  %v1614_v18 = vcombine.low %v1151_v14, %v1165_v22  ;;  %v1179_v32 = vsel %vm2001_vm3, %v1174_v19, %v1178_v23  ;;  %v1193_v36 = vsel %vm2001_vm3, %v1188_v24, %v1192_v7  ;;  %v1535_v20 = vcombine.low %v2034_v16, %v193_v34 }
  0x3f   : > { %1711 = vmatprep.mubr.msk.bf16.mxu1 %vm333_vm0, %v1532_v21  ;;  %v1615_v13 = vcombine.low %v1179_v32, %v1193_v36  ;;  %v1543_v30 = vcombine.low %v2015_v63, %v2029_v6  ;;  %v617_v53 = vrot.slane %v615_v38, 4  ;;  %v620_v4 = vrot.slane %v618_v39, 5 }
  0x40   : > { %v1544_v63 = vcombine.low %v2048_v26, %v2072_v43  ;;  %v1545_v6 = vcombine.low %v2081_v50, %v2096_v9  ;;  %v1565_v43 = vcombine.low %v1957_v8, %v2054_v28  ;;  %v1640_v8 = vld [vmem:[%s2239_s2] ss:$0 sm:$0xff] }
  0x41   : > { %1762 = vmatmul.mubr.msk.bf16.vlgmr.msra.gmra.mrb[0].mxu0 %vm333_vm0, %v1613_v12  ;;  %v621_v40 = vor.u32 %v620_v4, %v617_v53 }
  0x42   : > { %1765 = vmatprep.mubr.msk.bf16.mxu0 %vm333_vm0, %v1614_v18  ;;  %1770 = vmatpush3.bf16.msra.mxu0 %v2124_v51  ;;  %v1883_v51 = vld [vmem:[%s1948_s26 + $0xe8] ss:$8 sps:$4 sm:$0xff]  }
  0x43   : > { %v622_v16 = vrot.slane %v621_v40, 4 }
  0x46   : > { %1712 = vmatmul.mubr.msk.bf16.vlgmr.msra.gmra.mrb[0].mxu1 %vm333_vm0, %v1533_v5 }
  0x47   : > { %1720 = vmatpush3.bf16.msra.mxu1 %v1877_v31  ;;  %1715 = vmatprep.mubr.msk.bf16.mxu1 %vm333_vm0, %v1534_v33  ;;  %v194_v31 = vld [vmem:[%s1948_s26 + $0x44] sm:$0x1] }
  0x48   : > { %1779 = vmatprep.subr.bf16.mxu1 %v1928_v0  ;;  %v624_v41 = vshll.u32 %v194_v31, 16 }
  0x49   : > { %1766 = vmatmul.mubr.msk.bf16.gmra.mrb[4].mxu0 %vm333_vm0, %v1615_v13 }
  0x4a   : > { %1771 = vmatprep.mubr.msk.bf16.mxu0 %vm333_vm0, %v1882_v37  ;;  %v626_v42 = vrot.slane %v624_v41, 5 }
  0x4c   : > { %v627_v47 = vsel %vm2001_vm3, %v622_v16, %v626_v42 }
  0x4d   : > { %v1546_v26 = vcombine.low %v2107_v27, %v627_v47 }
  0x4e   : > { %1716 = vmatmul.mubr.msk.bf16.gmra.mrb[4].mxu1 %vm333_vm0, %v1535_v20 }
  0x4f   : > { %1721 = vmatprep.mubr.msk.bf16.mxu1 %vm333_vm0, %v1543_v30 }
  0x51   : > { %1772 = vmatmul.mubr.msk.bf16.vlgmr.msra.gmra.mrb[0].mxu0 %vm333_vm0, %v1883_v51 }
  0x52   : > { %1775 = vmatprep.mubr.msk.bf16.mxu0 %vm333_vm0, %v1884_v11 }
  0x56   : > { %1722 = vmatmul.mubr.msk.bf16.vlgmr.msra.gmra.mrb[0].mxu1 %vm333_vm0, %v1544_v63 }
  0x57   : > { %1780 = vmatpush3.bf16.msra.mxu1 %v1928_v0  ;;  %1725 = vmatprep.mubr.msk.bf16.mxu1 %vm333_vm0, %v1545_v6 }
  0x59   : > { %1776 = vmatmul.mubr.msk.bf16.gmra.mrb[4].mxu0 %vm333_vm0, %v1885_v45 }
  0x5e   : > { %1726 = vmatmul.mubr.msk.bf16.gmra.mrb[4].mxu1 %vm333_vm0, %v1546_v26 }
  0x5f   : > { %1735 = vmatprep.mubr.msk.bf16.mxu1 %vm333_vm0, %v1565_v43 }
  0x6a   : > { %1736 = vmatmul.mubr.msk.bf16.vlgmr.msra.gmra.mrb[4].mxu1 %vm333_vm0, %v1566_v55 }
 0x124   : > { %v1773_v0 = vpop.f32.mrb[0].mxu0 }
 0x125   : > { %v1384_v44 = vpop.f32.mrb[1].mxu0 }
 0x126   : > { %v1774_v50 = vpop.f32.mrb[2].mxu0 }
 0x127   : > { %v1387_v9 = vpop.f32.mrb[3].mxu0 }
 0x129   : > { %v1723_v27 = vpop.f32.mrb[0].mxu1 }
 0x12a   : > { %v688_v28 = vpop.f32.mrb[1].mxu1  ;;  %v1781_v48 = vadd.f32 %v1773_v0, %v1723_v27 }
 0x12b   : > { %v1724_v49 = vpop.f32.mrb[2].mxu1  ;;  %v1782_v29 = vadd.f32 %v1384_v44, %v688_v28 }
 0x12c   : > { %v1777_v35 = vpop.f32.mrb[4].mxu0  ;;  %v691_v55 = vpop.f32.mrb[3].mxu1  ;;  %v1432_v21 = vadd.f32 %v1781_v48, %v1640_v8  ;;  %v1783_v52 = vadd.f32 %v1774_v50, %v1724_v49 }
 0x12d   : > { %v1400_v2 = vpop.f32.mrb[5].mxu0  ;;  %v1430_v54 = vadd.f32 %v1782_v29, %v1640_v8  ;;  %v1784_v56 = vadd.f32 %v1387_v9, %v691_v55 }
 0x12e   : > { %v1778_v59 = vpop.f32.mrb[6].mxu0  ;;  %1440 = vst [vmem:[%s2224_s17 + $0x10] sm:$0xff] %v1432_v21  ;;  %v1433_v61 = vadd.f32 %v1783_v52, %v1640_v8 }
 0x12f   : > { %v1403_v25 = vpop.f32.mrb[7].mxu0  ;;  %1438 = vst [vmem:[%s2224_s17] sm:$0xff] %v1430_v54  ;;  %v1431_v46 = vadd.f32 %v1784_v56, %v1640_v8 }
 0x130   : > { %1441 = vst [vmem:[%s2224_s17 + $0x18] sm:$0xff] %v1433_v61 }
 0x131   : > { %1439 = vst [vmem:[%s2224_s17 + $0x8] sm:$0xff] %v1431_v46 }
 0x13d   : > { %v1737_v60 = vpop.f32.mrb[4].mxu1 }
 0x13e   : > { %v1785_v3 = vadd.f32 %v1777_v35, %v1737_v60  ;;  %v828_v15 = vpop.f32.mrb[5].mxu1 }
 0x13f   : > { %v1786_v17 = vadd.f32 %v1400_v2, %v828_v15  ;;  %v1738_v57 = vpop.f32.mrb[6].mxu1 }
 0x140   : > { %v1436_v58 = vadd.f32 %v1785_v3, %v1640_v8  ;;  %v1787_v62 = vadd.f32 %v1778_v59, %v1738_v57  ;;  %v831_v1 = vpop.f32.mrb[7].mxu1 }
 0x141   : > { %v1434_v10 = vadd.f32 %v1786_v17, %v1640_v8  ;;  %v1788_v12 = vadd.f32 %v1403_v25, %v831_v1 }
 0x142   : > { %1444 = vst [vmem:[%s2224_s17 + $0x30] sm:$0xff] %v1436_v58  ;;  %v1437_v14 = vadd.f32 %v1787_v62, %v1640_v8 }
 0x143   : > { %1442 = vst [vmem:[%s2224_s17 + $0x20] sm:$0xff] %v1434_v10  ;;  %v1435_v19 = vadd.f32 %v1788_v12, %v1640_v8 }
 0x144   : > { %1445 = vst [vmem:[%s2224_s17 + $0x38] sm:$0xff] %v1437_v14 }
 0x145   : > { %1443 = vst [vmem:[%s2224_s17 + $0x28] sm:$0xff] %v1435_v19 }
 0x146 PF: > { %s13_s12 = sadd.s32 1, %s1893_s12  }
 0x147   : > { %p10_p5 = scmp.ge.s32.totalorder %s13_s12, 4  }
 0x149   :  { %12 = sbr.rel (!%p10_p5) target bundleno = 1 (0x1), region = 73 }

</bundles_post_ra>
